<compile_context>
chip_gen: v5e
topology: v5e:2x2
jax: 0.10.0
libtpu: 0.0.40
codegen_flags: <defaults>
</compile_context>

<pallas_src>
import numpy as np
import jax
import jax.numpy as jnp
from jax.experimental import pallas as pl
from jax.experimental.pallas import tpu as pltpu


def _make_kernel(num_layers, n_tiles, tile_m, hidden):
    def kernel(eps_ref, x_ref, a_ref, p_ref,
               w1_ref, b1_ref, w2_ref, b2_ref,
               lin1_w_ref, lin1_b_ref, lin2_w_ref, lin2_b_ref,
               out_ref,
               h_even, h_odd, pooled_ref):
        l = pl.program_id(0)          # layer index (outer, "arbitrary")
        i = pl.program_id(1)          # node-row tile index (inner, "arbitrary")

        # One-time init: copy (padded) input node features into the even slot.
        @pl.when((l == 0) & (i == 0))
        def _():
            h_even[...] = x_ref[...]

        eps = eps_ref[l]
        w1 = w1_ref[0]                # (H, H)  bf16
        b1 = b1_ref[0]                # (1, H)  f32
        w2 = w2_ref[0]
        b2 = b2_ref[0]
        a_tile = a_ref[...]           # (TILE_M, N_pad) bf16
        row = pl.multiple_of(i * tile_m, tile_m)

        def layer_step(h_src, h_dst):
            # GIN aggregation for this tile of destination nodes:
            #   agg = A[rows, :] @ h  +  (1 + eps_l) * h[rows]
            h_all = h_src[...]                                    # (N_pad, H) bf16
            h_self = h_src[pl.ds(row, tile_m), :].astype(jnp.float32)
            agg = jnp.dot(a_tile, h_all, preferred_element_type=jnp.float32)
            agg = agg + (1.0 + eps) * h_self
            # GIN MLP: Linear -> BN -> ReLU -> Linear -> BN -> ReLU (BN folded).
            h = jnp.dot(agg.astype(jnp.bfloat16), w1,
                        preferred_element_type=jnp.float32) + b1
            h = jnp.maximum(h, 0.0)
            h = jnp.dot(h.astype(jnp.bfloat16), w2,
                        preferred_element_type=jnp.float32) + b2
            h = jnp.maximum(h, 0.0)
            h_dst[pl.ds(row, tile_m), :] = h.astype(h_dst.dtype)

            # Layer complete on its last row tile: hierarchical mean pooling
            # (node->subgraph->graph, pre-composed into P) of this layer's h.
            @pl.when(i == n_tiles - 1)
            def _():
                pooled_ref[l] = jnp.dot(p_ref[...],
                                        h_dst[...].astype(jnp.float32),
                                        preferred_element_type=jnp.float32)

        # Ping-pong node features between the two scratch buffers across layers
        # (even layers read h_even / write h_odd, odd layers the opposite).
        even = (l % 2) == 0

        @pl.when(even)
        def _():
            layer_step(h_even, h_odd)

        @pl.when(jnp.logical_not(even))
        def _():
            layer_step(h_odd, h_even)

        # Classification head at the very last grid step:
        # relu(lin1(cat(pooled_1..L))) -> (dropout = id in eval) -> lin2 -> log_softmax.
        @pl.when((l == num_layers - 1) & (i == n_tiles - 1))
        def _():
            cat = jnp.concatenate(
                [pooled_ref[ll] for ll in range(num_layers)], axis=-1)  # (G, L*H)
            h1 = jnp.dot(cat.astype(jnp.bfloat16), lin1_w_ref[...],
                         preferred_element_type=jnp.float32) + lin1_b_ref[...]
            h1 = jnp.maximum(h1, 0.0)
            logits = jnp.dot(h1.astype(jnp.bfloat16), lin2_w_ref[...],
                             preferred_element_type=jnp.float32) + lin2_b_ref[...]
            m = jnp.max(logits, axis=-1, keepdims=True)
            lse = m + jnp.log(jnp.sum(jnp.exp(logits - m), axis=-1, keepdims=True))
            out_ref[...] = logits - lse

    return kernel


def nested_gin_forward(x, adj, p1, p2, eps, layer_params,
                       lin1_w, lin1_b, lin2_w, lin2_b, *, tile_m=16):
    """Runs the NestedGIN forward pass with a single Pallas call."""
    num_layers = len(layer_params)
    hidden = lin2_w.shape[0]
    num_graphs = p2.shape[0]
    num_classes = lin2_w.shape[1]
    n_nodes, f_in = x.shape
    assert f_in <= hidden, "input feature width must be <= hidden"
    assert tile_m % 16 == 0, "tile_m must be a multiple of 16 (bf16 sublane packing)"

    n_pad = ((n_nodes + tile_m - 1) // tile_m) * tile_m
    n_tiles = n_pad // tile_m

    # Hoisted layer-invariant pooling composition (node->subgraph->graph).
    pool = (p2 @ p1).astype(jnp.float32)                                   # (G, N)
    pool = jnp.pad(pool, ((0, 0), (0, n_pad - n_nodes)))

    # Pad node features to `hidden` lanes (layer-0 W1 gets matching zero rows,
    # math unchanged) and to n_pad rows; pad adjacency accordingly.  bf16 cast.
    x_p = jnp.pad(x, ((0, n_pad - n_nodes), (0, hidden - f_in))).astype(jnp.bfloat16)
    adj_p = jnp.pad(adj, ((0, n_pad - n_nodes), (0, n_pad - n_nodes))).astype(jnp.bfloat16)

    w1s, b1s, w2s, b2s = [], [], [], []
    for (w1, b1, w2, b2) in layer_params:
        if w1.shape[0] < hidden:
            w1 = jnp.pad(w1, ((0, hidden - w1.shape[0]), (0, 0)))
        w1s.append(w1)
        b1s.append(b1.reshape(1, hidden))
        w2s.append(w2)
        b2s.append(b2.reshape(1, hidden))
    w1s = jnp.stack(w1s).astype(jnp.bfloat16)          # (L, H, H)
    w2s = jnp.stack(w2s).astype(jnp.bfloat16)          # (L, H, H)
    b1s = jnp.stack(b1s).astype(jnp.float32)           # (L, 1, H)
    b2s = jnp.stack(b2s).astype(jnp.float32)           # (L, 1, H)

    lin1_w = lin1_w.astype(jnp.bfloat16)                               # (L*H, H)
    lin2_w = lin2_w.astype(jnp.bfloat16)                               # (H, C)
    lin1_b = lin1_b.reshape(1, hidden).astype(jnp.float32)
    lin2_b = lin2_b.reshape(1, num_classes).astype(jnp.float32)
    eps = eps.astype(jnp.float32)

    kernel = _make_kernel(num_layers, n_tiles, tile_m, hidden)

    grid_spec = pltpu.PrefetchScalarGridSpec(
        num_scalar_prefetch=0,
        grid=(num_layers, n_tiles),
        in_specs=[
            pl.BlockSpec(memory_space=pltpu.SMEM),                       # eps (L,)
            pl.BlockSpec((n_pad, hidden), lambda l, i: (0, 0)),          # x (resident)
            pl.BlockSpec((tile_m, n_pad), lambda l, i: (i, 0)),          # A row slab (streamed)
            pl.BlockSpec((num_graphs, n_pad), lambda l, i: (0, 0)),      # pooling P (resident)
            pl.BlockSpec((1, hidden, hidden), lambda l, i: (l, 0, 0)),   # W1[l]
            pl.BlockSpec((1, 1, hidden), lambda l, i: (l, 0, 0)),        # b1[l]
            pl.BlockSpec((1, hidden, hidden), lambda l, i: (l, 0, 0)),   # W2[l]
            pl.BlockSpec((1, 1, hidden), lambda l, i: (l, 0, 0)),        # b2[l]
            pl.BlockSpec((num_layers * hidden, hidden), lambda l, i: (0, 0)),  # lin1_w
            pl.BlockSpec((1, hidden), lambda l, i: (0, 0)),              # lin1_b
            pl.BlockSpec((hidden, num_classes), lambda l, i: (0, 0)),    # lin2_w
            pl.BlockSpec((1, num_classes), lambda l, i: (0, 0)),         # lin2_b
        ],
        out_specs=pl.BlockSpec((num_graphs, num_classes), lambda l, i: (0, 0)),
        scratch_shapes=[
            pltpu.VMEM((n_pad, hidden), jnp.bfloat16),                   # h (even layers read)
            pltpu.VMEM((n_pad, hidden), jnp.bfloat16),                   # h (odd layers read)
            pltpu.VMEM((num_layers, num_graphs, hidden), jnp.float32),   # pooled per layer
        ],
    )

    return pl.pallas_call(
        kernel,
        out_shape=jax.ShapeDtypeStruct((num_graphs, num_classes), jnp.float32),
        grid_spec=grid_spec,
        compiler_params=pltpu.CompilerParams(
            # Both axes are sequentially dependent (layers via the ping-pong
            # scratch, row tiles write a shared feature map).
            dimension_semantics=("arbitrary", "arbitrary"),
            vmem_limit_bytes=48 * 1024 * 1024,
        ),
    )(eps, x_p, adj_p, pool, w1s, b1s, w2s, b2s, lin1_w, lin1_b, lin2_w, lin2_b)


def _fold_bn(w, b, bn_eps=1e-5):
    # BatchNorm1d eval with default stats: running_mean=0, running_var=1, gamma=1, beta=0.
    scale = 1.0 / jnp.sqrt(1.0 + bn_eps)
    return w * scale, b * scale


def _reference_f32(x, adj, pool, eps, layer_params, lin1_w, lin1_b, lin2_w, lin2_b):
    """Pure f32 reference of the module's forward (padding-free)."""
    h = x
    pooled = []
    for l, (w1, b1, w2, b2) in enumerate(layer_params):
        agg = adj @ h + (1.0 + eps[l]) * h
        h = jnp.maximum(agg @ w1 + b1, 0.0)
        h = jnp.maximum(h @ w2 + b2, 0.0)
        pooled.append(pool @ h)
    cat = jnp.concatenate(pooled, axis=-1)
    h1 = jnp.maximum(cat @ lin1_w + lin1_b, 0.0)
    logits = h1 @ lin2_w + lin2_b
    return jax.nn.log_softmax(logits, axis=-1)


def _reference_mirrored(x, adj, pool, eps, layer_params, lin1_w, lin1_b, lin2_w, lin2_b):
    """Reference that mirrors the kernel's bf16 quantization points exactly."""
    bf16, f32 = jnp.bfloat16, jnp.float32
    hi = jax.lax.Precision.HIGHEST
    h = x.astype(bf16)
    a = adj.astype(bf16).astype(f32)
    pooled = []
    for l, (w1, b1, w2, b2) in enumerate(layer_params):
        hf = h.astype(f32)
        agg = a @ hf + (1.0 + eps[l]) * hf
        z = jnp.maximum(agg.astype(bf16).astype(f32) @ w1.astype(bf16).astype(f32) + b1, 0.0)
        z = jnp.maximum(z.astype(bf16).astype(f32) @ w2.astype(bf16).astype(f32) + b2, 0.0)
        h = z.astype(bf16)
        pooled.append(jnp.dot(pool.astype(f32), h.astype(f32), precision=hi))
    cat = jnp.concatenate(pooled, axis=-1)
    h1 = jnp.maximum(cat.astype(bf16).astype(f32) @ lin1_w.astype(bf16).astype(f32) + lin1_b, 0.0)
    logits = h1.astype(bf16).astype(f32) @ lin2_w.astype(bf16).astype(f32) + lin2_b
    return jax.nn.log_softmax(logits, axis=-1)


if __name__ == "__main__":
    # Small shapes consistent with the module's forward.
    N, F_in, H, L = 32, 4, 32, 3          # nodes, dataset.num_features, hidden, num_layers
    S, G, C = 8, 2, 4                     # subgraphs, graphs, dataset.num_classes
    E = 64                                # directed edges
    TM = 16                               # A row-tile (node) size

    key = jax.random.PRNGKey(0)
    keys = jax.random.split(key, 20)

    # node features
    x = jax.random.normal(keys[0], (N, F_in), jnp.float32)

    # deterministic random edge_index -> dense adjacency (A[dst, src] counts edges)
    src = jax.random.randint(keys[1], (E,), 0, N)
    dst = jax.random.randint(keys[2], (E,), 0, N)
    adj = jnp.zeros((N, N), jnp.float32).at[dst, src].add(1.0)

    # node_to_subgraph / subgraph_to_graph -> mean-pooling matrices
    node_to_subgraph = jnp.arange(N) // (N // S)
    subgraph_to_graph = jnp.arange(S) // (S // G)
    p1 = (jnp.arange(S)[:, None] == node_to_subgraph[None, :]).astype(jnp.float32)
    p1 = p1 / jnp.sum(p1, axis=1, keepdims=True)
    p2 = (jnp.arange(G)[:, None] == subgraph_to_graph[None, :]).astype(jnp.float32)
    p2 = p2 / jnp.sum(p2, axis=1, keepdims=True)

    # GINConv train_eps=True (learnable scalar per layer); nonzero to exercise the path.
    eps = jnp.array([0.05, -0.03, 0.02], jnp.float32)

    # GIN layer MLP params (BN folded, biases kept (1, H) for lane layout)
    layer_params = []
    kidx = 3
    for l in range(L):
        fin = F_in if l == 0 else H
        w1 = jax.random.normal(keys[kidx], (fin, H), jnp.float32) * 0.1; kidx += 1
        b1 = jax.random.normal(keys[kidx], (1, H), jnp.float32) * 0.1;  kidx += 1
        w2 = jax.random.normal(keys[kidx], (H, H), jnp.float32) * 0.1;  kidx += 1
        b2 = jax.random.normal(keys[kidx], (1, H), jnp.float32) * 0.1;  kidx += 1
        w1, b1 = _fold_bn(w1, b1)
        w2, b2 = _fold_bn(w2, b2)
        layer_params.append((w1, b1, w2, b2))

    lin1_w = jax.random.normal(keys[kidx], (L * H, H), jnp.float32) * 0.1; kidx += 1
    lin1_b = jax.random.normal(keys[kidx], (1, H), jnp.float32) * 0.1;     kidx += 1
    lin2_w = jax.random.normal(keys[kidx], (H, C), jnp.float32) * 0.1;     kidx += 1
    lin2_b = jax.random.normal(keys[kidx], (1, C), jnp.float32) * 0.1;     kidx += 1

    out = nested_gin_forward(x, adj, p1, p2, eps, layer_params,
                             lin1_w, lin1_b, lin2_w, lin2_b, tile_m=TM)
    out = jax.block_until_ready(out)

    pool = p2 @ p1

    # Tight check against a reference that mirrors the kernel's bf16 pipeline.
    ref_mirror = _reference_mirrored(x, adj, pool, eps, layer_params,
                                     lin1_w, lin1_b, lin2_w, lin2_b)
    np.testing.assert_allclose(np.asarray(out), np.asarray(ref_mirror),
                               rtol=5e-3, atol=5e-3)

    # Loose check against the pure-f32 module semantics (absorbs bf16 error).
    ref_f32 = _reference_f32(x, adj, pool, eps, layer_params,
                             lin1_w, lin1_b, lin2_w, lin2_b)
    np.testing.assert_allclose(np.asarray(out), np.asarray(ref_f32),
                               rtol=2e-2, atol=2e-2)

    print("KERNEL_OK")
</pallas_src>

<mosaic_0001>
module attributes {stable_mosaic.version = 11 : i64} {
  func.func @kernel(%arg0: i32, %arg1: i32, %arg2: memref<3xf32, #tpu.memory_space<smem>>, %arg3: memref<32x32xbf16, #tpu.memory_space<vmem>>, %arg4: memref<16x32xbf16, #tpu.memory_space<vmem>>, %arg5: memref<2x32xf32, #tpu.memory_space<vmem>>, %arg6: memref<1x32x32xbf16, #tpu.memory_space<vmem>>, %arg7: memref<1x1x32xf32, #tpu.memory_space<vmem>>, %arg8: memref<1x32x32xbf16, #tpu.memory_space<vmem>>, %arg9: memref<1x1x32xf32, #tpu.memory_space<vmem>>, %arg10: memref<96x32xbf16, #tpu.memory_space<vmem>>, %arg11: memref<1x32xf32, #tpu.memory_space<vmem>>, %arg12: memref<32x4xbf16, #tpu.memory_space<vmem>>, %arg13: memref<1x4xf32, #tpu.memory_space<vmem>>, %arg14: memref<2x4xf32, #tpu.memory_space<vmem>>, %arg15: memref<32x32xbf16, #tpu.memory_space<vmem>>, %arg16: memref<32x32xbf16, #tpu.memory_space<vmem>>, %arg17: memref<3x2x32xf32, #tpu.memory_space<vmem>>) attributes {dimension_semantics = [#tpu.dimension_semantics<arbitrary>, #tpu.dimension_semantics<arbitrary>], iteration_bounds = array<i64: 3, 2>, scalar_prefetch = 0 : i64, scratch_operands = 3 : i64, tpu.core_type = #tpu.core_type<tc>, window_params = [{transform_indices = @transform_0, window_bounds = array<i64: 3>}, {pipeline_mode = #tpu.pipeline_mode<synchronous>, transform_indices = @transform_1, window_bounds = array<i64: 32, 32>}, {transform_indices = @transform_2, window_bounds = array<i64: 16, 32>}, {pipeline_mode = #tpu.pipeline_mode<synchronous>, transform_indices = @transform_3, window_bounds = array<i64: 2, 32>}, {transform_indices = @transform_4, window_bounds = array<i64: 1, 32, 32>}, {transform_indices = @transform_5, window_bounds = array<i64: 1, 1, 32>}, {transform_indices = @transform_6, window_bounds = array<i64: 1, 32, 32>}, {transform_indices = @transform_7, window_bounds = array<i64: 1, 1, 32>}, {pipeline_mode = #tpu.pipeline_mode<synchronous>, transform_indices = @transform_8, window_bounds = array<i64: 96, 32>}, {pipeline_mode = #tpu.pipeline_mode<synchronous>, transform_indices = @transform_9, window_bounds = array<i64: 1, 32>}, {pipeline_mode = #tpu.pipeline_mode<synchronous>, transform_indices = @transform_10, window_bounds = array<i64: 32, 4>}, {pipeline_mode = #tpu.pipeline_mode<synchronous>, transform_indices = @transform_11, window_bounds = array<i64: 1, 4>}, {pipeline_mode = #tpu.pipeline_mode<synchronous>, transform_indices = @transform_12, window_bounds = array<i64: 2, 4>}]} {
    %c0_i32 = arith.constant 0 : i32
    %0 = arith.cmpi eq, %arg0, %c0_i32 : i32
    %c0_i32_0 = arith.constant 0 : i32
    %1 = arith.cmpi eq, %arg1, %c0_i32_0 : i32
    %2 = arith.andi %0, %1 : i1
    %3 = arith.extui %2 : i1 to i32
    %c0_i32_1 = arith.constant 0 : i32
    %4 = arith.cmpi ne, %3, %c0_i32_1 : i32
    scf.if %4 {
      %c0_25 = arith.constant 0 : index
      %c0_26 = arith.constant 0 : index
      %39 = vector.load %arg3[%c0_25, %c0_26] : memref<32x32xbf16, #tpu.memory_space<vmem>>, vector<32x32xbf16>
      %c0_27 = arith.constant 0 : index
      %c0_28 = arith.constant 0 : index
      %40 = vector.load %arg15[%c0_27, %c0_28] : memref<32x32xbf16, #tpu.memory_space<vmem>>, vector<32x32xbf16>
      tpu.vector_store %arg15[%c0_27, %c0_28], %39 {strides = array<i32>} : memref<32x32xbf16, #tpu.memory_space<vmem>>, vector<32x32xbf16>,
    } else {
    }
    %5 = arith.index_cast %arg0 : i32 to index
    %6 = memref.load %arg2[%5] : memref<3xf32, #tpu.memory_space<smem>>
    %c0 = arith.constant 0 : index
    %c0_2 = arith.constant 0 : index
    %c0_3 = arith.constant 0 : index
    %7 = vector.load %arg6[%c0, %c0_2, %c0_3] : memref<1x32x32xbf16, #tpu.memory_space<vmem>>, vector<1x32x32xbf16>
    %8 = vector.shape_cast %7 : vector<1x32x32xbf16> to vector<32x32xbf16>
    %c0_4 = arith.constant 0 : index
    %c0_5 = arith.constant 0 : index
    %c0_6 = arith.constant 0 : index
    %9 = vector.load %arg7[%c0_4, %c0_5, %c0_6] : memref<1x1x32xf32, #tpu.memory_space<vmem>>, vector<1x1x32xf32>
    %10 = vector.shape_cast %9 : vector<1x1x32xf32> to vector<1x32xf32>
    %c0_7 = arith.constant 0 : index
    %c0_8 = arith.constant 0 : index
    %c0_9 = arith.constant 0 : index
    %11 = vector.load %arg8[%c0_7, %c0_8, %c0_9] : memref<1x32x32xbf16, #tpu.memory_space<vmem>>, vector<1x32x32xbf16>
    %12 = vector.shape_cast %11 : vector<1x32x32xbf16> to vector<32x32xbf16>
    %c0_10 = arith.constant 0 : index
    %c0_11 = arith.constant 0 : index
    %c0_12 = arith.constant 0 : index
    %13 = vector.load %arg9[%c0_10, %c0_11, %c0_12] : memref<1x1x32xf32, #tpu.memory_space<vmem>>, vector<1x1x32xf32>
    %14 = vector.shape_cast %13 : vector<1x1x32xf32> to vector<1x32xf32>
    %c0_13 = arith.constant 0 : index
    %c0_14 = arith.constant 0 : index
    %15 = vector.load %arg4[%c0_13, %c0_14] : memref<16x32xbf16, #tpu.memory_space<vmem>>, vector<16x32xbf16>
    %c16_i32 = arith.constant 16 : i32
    %16 = arith.muli %arg1, %c16_i32 : i32
    %17 = tpu.assume_multiple %16, 16 : i32
    %c2_i32 = arith.constant 2 : i32
    %c0_i32_15 = arith.constant 0 : i32
    %18 = arith.cmpi eq, %c2_i32, %c0_i32_15 : i32
    %c1_i32 = arith.constant 1 : i32
    %19 = arith.select %18, %c1_i32, %c2_i32 : i32
    %20 = arith.remsi %arg0, %19 : i32
    %c0_i32_16 = arith.constant 0 : i32
    %21 = arith.cmpi ne, %20, %c0_i32_16 : i32
    %c0_i32_17 = arith.constant 0 : i32
    %22 = arith.cmpi slt, %20, %c0_i32_17 : i32
    %c0_i32_18 = arith.constant 0 : i32
    %23 = arith.cmpi slt, %19, %c0_i32_18 : i32
    %24 = arith.xori %22, %23 : i1
    %25 = arith.andi %24, %21 : i1
    %26 = arith.addi %20, %19 : i32
    %27 = arith.select %25, %26, %20 : i32
    %c0_i32_19 = arith.constant 0 : i32
    %28 = arith.cmpi eq, %27, %c0_i32_19 : i32
    %29 = arith.extui %28 : i1 to i32
    %c0_i32_20 = arith.constant 0 : i32
    %30 = arith.cmpi ne, %29, %c0_i32_20 : i32
    scf.if %30 {
      %c0_25 = arith.constant 0 : index
      %c0_26 = arith.constant 0 : index
      %39 = vector.load %arg15[%c0_25, %c0_26] : memref<32x32xbf16, #tpu.memory_space<vmem>>, vector<32x32xbf16>
      %40 = arith.index_cast %17 : i32 to index
      %c0_27 = arith.constant 0 : index
      %41 = vector.load %arg15[%40, %c0_27] : memref<32x32xbf16, #tpu.memory_space<vmem>>, vector<16x32xbf16>
      %42 = arith.extf %41 : vector<16x32xbf16> to vector<16x32xf32>
      %cst = arith.constant dense<0.000000e+00> : vector<16x32xf32>
      %43 = tpu.matmul %15, %39, %cst {dimension_numbers = #tpu.dot_dimension_numbers<[1], [0], [0], [1], [0, 0, 1, 1], [], []>} : vector<16x32xbf16>, vector<32x32xbf16>, vector<16x32xf32> -> vector<16x32xf32>
      %cst_28 = arith.constant 1.000000e+00 : f32
      %44 = arith.addf %cst_28, %6 : f32
      %45 = vector.broadcast %44 : f32 to vector<16x32xf32>
      %46 = arith.mulf %45, %42 : vector<16x32xf32>
      %47 = arith.addf %43, %46 : vector<16x32xf32>
      %48 = arith.truncf %47 : vector<16x32xf32> to vector<16x32xbf16>
      %cst_29 = arith.constant dense<0.000000e+00> : vector<16x32xf32>
      %49 = tpu.matmul %48, %8, %cst_29 {dimension_numbers = #tpu.dot_dimension_numbers<[1], [0], [0], [1], [0, 0, 1, 1], [], []>} : vector<16x32xbf16>, vector<32x32xbf16>, vector<16x32xf32> -> vector<16x32xf32>
      %50 = vector.broadcast %10 : vector<1x32xf32> to vector<16x32xf32>
      %51 = arith.addf %49, %50 : vector<16x32xf32>
      %cst_30 = arith.constant 0.000000e+00 : f32
      %52 = vector.broadcast %cst_30 : f32 to vector<16x32xf32>
      %53 = arith.maximumf %51, %52 : vector<16x32xf32>
      %54 = arith.truncf %53 : vector<16x32xf32> to vector<16x32xbf16>
      %cst_31 = arith.constant dense<0.000000e+00> : vector<16x32xf32>
      %55 = tpu.matmul %54, %12, %cst_31 {dimension_numbers = #tpu.dot_dimension_numbers<[1], [0], [0], [1], [0, 0, 1, 1], [], []>} : vector<16x32xbf16>, vector<32x32xbf16>, vector<16x32xf32> -> vector<16x32xf32>
      %56 = vector.broadcast %14 : vector<1x32xf32> to vector<16x32xf32>
      %57 = arith.addf %55, %56 : vector<16x32xf32>
      %cst_32 = arith.constant 0.000000e+00 : f32
      %58 = vector.broadcast %cst_32 : f32 to vector<16x32xf32>
      %59 = arith.maximumf %57, %58 : vector<16x32xf32>
      %60 = arith.truncf %59 : vector<16x32xf32> to vector<16x32xbf16>
      %61 = arith.index_cast %17 : i32 to index
      %c0_33 = arith.constant 0 : index
      %62 = vector.load %arg16[%61, %c0_33] : memref<32x32xbf16, #tpu.memory_space<vmem>>, vector<16x32xbf16>
      tpu.vector_store %arg16[%61, %c0_33], %60 {strides = array<i32>} : memref<32x32xbf16, #tpu.memory_space<vmem>>, vector<16x32xbf16>,
      %c1_i32_34 = arith.constant 1 : i32
      %63 = arith.cmpi eq, %arg1, %c1_i32_34 : i32
      %64 = arith.extui %63 : i1 to i32
      %c0_i32_35 = arith.constant 0 : i32
      %65 = arith.cmpi ne, %64, %c0_i32_35 : i32
      scf.if %65 {
        %c0_36 = arith.constant 0 : index
        %c0_37 = arith.constant 0 : index
        %66 = vector.load %arg5[%c0_36, %c0_37] : memref<2x32xf32, #tpu.memory_space<vmem>>, vector<2x32xf32>
        %c0_38 = arith.constant 0 : index
        %c0_39 = arith.constant 0 : index
        %67 = vector.load %arg16[%c0_38, %c0_39] : memref<32x32xbf16, #tpu.memory_space<vmem>>, vector<32x32xbf16>
        %68 = arith.extf %67 : vector<32x32xbf16> to vector<32x32xf32>
        %cst_40 = arith.constant dense<0.000000e+00> : vector<2x32xf32>
        %69 = tpu.matmul %66, %68, %cst_40 {dimension_numbers = #tpu.dot_dimension_numbers<[1], [0], [0], [1], [0, 0, 1, 1], [], []>} : vector<2x32xf32>, vector<32x32xf32>, vector<2x32xf32> -> vector<2x32xf32>
        %70 = arith.index_cast %arg0 : i32 to index
        %c0_41 = arith.constant 0 : index
        %c0_42 = arith.constant 0 : index
        %71 = vector.load %arg17[%70, %c0_41, %c0_42] : memref<3x2x32xf32, #tpu.memory_space<vmem>>, vector<1x2x32xf32>
        %72 = vector.shape_cast %71 : vector<1x2x32xf32> to vector<2x32xf32>
        %73 = vector.shape_cast %69 : vector<2x32xf32> to vector<1x2x32xf32>
        tpu.vector_store %arg17[%70, %c0_41, %c0_42], %73 {strides = array<i32>} : memref<3x2x32xf32, #tpu.memory_space<vmem>>, vector<1x2x32xf32>,
      } else {
      }
    } else {
    }
    %true = arith.constant true
    %31 = arith.xori %28, %true : i1
    %32 = arith.extui %31 : i1 to i32
    %c0_i32_21 = arith.constant 0 : i32
    %33 = arith.cmpi ne, %32, %c0_i32_21 : i32
    scf.if %33 {
      %c0_25 = arith.constant 0 : index
      %c0_26 = arith.constant 0 : index
      %39 = vector.load %arg16[%c0_25, %c0_26] : memref<32x32xbf16, #tpu.memory_space<vmem>>, vector<32x32xbf16>
      %40 = arith.index_cast %17 : i32 to index
      %c0_27 = arith.constant 0 : index
      %41 = vector.load %arg16[%40, %c0_27] : memref<32x32xbf16, #tpu.memory_space<vmem>>, vector<16x32xbf16>
      %42 = arith.extf %41 : vector<16x32xbf16> to vector<16x32xf32>
      %cst = arith.constant dense<0.000000e+00> : vector<16x32xf32>
      %43 = tpu.matmul %15, %39, %cst {dimension_numbers = #tpu.dot_dimension_numbers<[1], [0], [0], [1], [0, 0, 1, 1], [], []>} : vector<16x32xbf16>, vector<32x32xbf16>, vector<16x32xf32> -> vector<16x32xf32>
      %cst_28 = arith.constant 1.000000e+00 : f32
      %44 = arith.addf %cst_28, %6 : f32
      %45 = vector.broadcast %44 : f32 to vector<16x32xf32>
      %46 = arith.mulf %45, %42 : vector<16x32xf32>
      %47 = arith.addf %43, %46 : vector<16x32xf32>
      %48 = arith.truncf %47 : vector<16x32xf32> to vector<16x32xbf16>
      %cst_29 = arith.constant dense<0.000000e+00> : vector<16x32xf32>
      %49 = tpu.matmul %48, %8, %cst_29 {dimension_numbers = #tpu.dot_dimension_numbers<[1], [0], [0], [1], [0, 0, 1, 1], [], []>} : vector<16x32xbf16>, vector<32x32xbf16>, vector<16x32xf32> -> vector<16x32xf32>
      %50 = vector.broadcast %10 : vector<1x32xf32> to vector<16x32xf32>
      %51 = arith.addf %49, %50 : vector<16x32xf32>
      %cst_30 = arith.constant 0.000000e+00 : f32
      %52 = vector.broadcast %cst_30 : f32 to vector<16x32xf32>
      %53 = arith.maximumf %51, %52 : vector<16x32xf32>
      %54 = arith.truncf %53 : vector<16x32xf32> to vector<16x32xbf16>
      %cst_31 = arith.constant dense<0.000000e+00> : vector<16x32xf32>
      %55 = tpu.matmul %54, %12, %cst_31 {dimension_numbers = #tpu.dot_dimension_numbers<[1], [0], [0], [1], [0, 0, 1, 1], [], []>} : vector<16x32xbf16>, vector<32x32xbf16>, vector<16x32xf32> -> vector<16x32xf32>
      %56 = vector.broadcast %14 : vector<1x32xf32> to vector<16x32xf32>
      %57 = arith.addf %55, %56 : vector<16x32xf32>
      %cst_32 = arith.constant 0.000000e+00 : f32
      %58 = vector.broadcast %cst_32 : f32 to vector<16x32xf32>
      %59 = arith.maximumf %57, %58 : vector<16x32xf32>
      %60 = arith.truncf %59 : vector<16x32xf32> to vector<16x32xbf16>
      %61 = arith.index_cast %17 : i32 to index
      %c0_33 = arith.constant 0 : index
      %62 = vector.load %arg15[%61, %c0_33] : memref<32x32xbf16, #tpu.memory_space<vmem>>, vector<16x32xbf16>
      tpu.vector_store %arg15[%61, %c0_33], %60 {strides = array<i32>} : memref<32x32xbf16, #tpu.memory_space<vmem>>, vector<16x32xbf16>,
      %c1_i32_34 = arith.constant 1 : i32
      %63 = arith.cmpi eq, %arg1, %c1_i32_34 : i32
      %64 = arith.extui %63 : i1 to i32
      %c0_i32_35 = arith.constant 0 : i32
      %65 = arith.cmpi ne, %64, %c0_i32_35 : i32
      scf.if %65 {
        %c0_36 = arith.constant 0 : index
        %c0_37 = arith.constant 0 : index
        %66 = vector.load %arg5[%c0_36, %c0_37] : memref<2x32xf32, #tpu.memory_space<vmem>>, vector<2x32xf32>
        %c0_38 = arith.constant 0 : index
        %c0_39 = arith.constant 0 : index
        %67 = vector.load %arg15[%c0_38, %c0_39] : memref<32x32xbf16, #tpu.memory_space<vmem>>, vector<32x32xbf16>
        %68 = arith.extf %67 : vector<32x32xbf16> to vector<32x32xf32>
        %cst_40 = arith.constant dense<0.000000e+00> : vector<2x32xf32>
        %69 = tpu.matmul %66, %68, %cst_40 {dimension_numbers = #tpu.dot_dimension_numbers<[1], [0], [0], [1], [0, 0, 1, 1], [], []>} : vector<2x32xf32>, vector<32x32xf32>, vector<2x32xf32> -> vector<2x32xf32>
        %70 = arith.index_cast %arg0 : i32 to index
        %c0_41 = arith.constant 0 : index
        %c0_42 = arith.constant 0 : index
        %71 = vector.load %arg17[%70, %c0_41, %c0_42] : memref<3x2x32xf32, #tpu.memory_space<vmem>>, vector<1x2x32xf32>
        %72 = vector.shape_cast %71 : vector<1x2x32xf32> to vector<2x32xf32>
        %73 = vector.shape_cast %69 : vector<2x32xf32> to vector<1x2x32xf32>
        tpu.vector_store %arg17[%70, %c0_41, %c0_42], %73 {strides = array<i32>} : memref<3x2x32xf32, #tpu.memory_space<vmem>>, vector<1x2x32xf32>,
      } else {
      }
    } else {
    }
    %c2_i32_22 = arith.constant 2 : i32
    %34 = arith.cmpi eq, %arg0, %c2_i32_22 : i32
    %c1_i32_23 = arith.constant 1 : i32
    %35 = arith.cmpi eq, %arg1, %c1_i32_23 : i32
    %36 = arith.andi %34, %35 : i1
    %37 = arith.extui %36 : i1 to i32
    %c0_i32_24 = arith.constant 0 : i32
    %38 = arith.cmpi ne, %37, %c0_i32_24 : i32
    scf.if %38 {
      %c0_25 = arith.constant 0 : index
      %c0_26 = arith.constant 0 : index
      %c0_27 = arith.constant 0 : index
      %39 = vector.load %arg17[%c0_25, %c0_26, %c0_27] : memref<3x2x32xf32, #tpu.memory_space<vmem>>, vector<1x2x32xf32>
      %40 = vector.shape_cast %39 : vector<1x2x32xf32> to vector<2x32xf32>
      %c1 = arith.constant 1 : index
      %c0_28 = arith.constant 0 : index
      %c0_29 = arith.constant 0 : index
      %41 = vector.load %arg17[%c1, %c0_28, %c0_29] : memref<3x2x32xf32, #tpu.memory_space<vmem>>, vector<1x2x32xf32>
      %42 = vector.shape_cast %41 : vector<1x2x32xf32> to vector<2x32xf32>
      %c2 = arith.constant 2 : index
      %c0_30 = arith.constant 0 : index
      %c0_31 = arith.constant 0 : index
      %43 = vector.load %arg17[%c2, %c0_30, %c0_31] : memref<3x2x32xf32, #tpu.memory_space<vmem>>, vector<1x2x32xf32>
      %44 = vector.shape_cast %43 : vector<1x2x32xf32> to vector<2x32xf32>
      %45 = tpu.concatenate %40, %42, %44 in 1 : vector<2x32xf32>, vector<2x32xf32>, vector<2x32xf32> -> vector<2x96xf32>
      %46 = arith.truncf %45 : vector<2x96xf32> to vector<2x96xbf16>
      %c0_32 = arith.constant 0 : index
      %c0_33 = arith.constant 0 : index
      %47 = vector.load %arg10[%c0_32, %c0_33] : memref<96x32xbf16, #tpu.memory_space<vmem>>, vector<96x32xbf16>
      %cst = arith.constant dense<0.000000e+00> : vector<2x32xf32>
      %48 = tpu.matmul %46, %47, %cst {dimension_numbers = #tpu.dot_dimension_numbers<[1], [0], [0], [1], [0, 0, 1, 1], [], []>} : vector<2x96xbf16>, vector<96x32xbf16>, vector<2x32xf32> -> vector<2x32xf32>
      %c0_34 = arith.constant 0 : index
      %c0_35 = arith.constant 0 : index
      %49 = vector.load %arg11[%c0_34, %c0_35] : memref<1x32xf32, #tpu.memory_space<vmem>>, vector<1x32xf32>
      %50 = vector.broadcast %49 : vector<1x32xf32> to vector<2x32xf32>
      %51 = arith.addf %48, %50 : vector<2x32xf32>
      %cst_36 = arith.constant 0.000000e+00 : f32
      %52 = vector.broadcast %cst_36 : f32 to vector<2x32xf32>
      %53 = arith.maximumf %51, %52 : vector<2x32xf32>
      %54 = arith.truncf %53 : vector<2x32xf32> to vector<2x32xbf16>
      %c0_37 = arith.constant 0 : index
      %c0_38 = arith.constant 0 : index
      %55 = vector.load %arg12[%c0_37, %c0_38] : memref<32x4xbf16, #tpu.memory_space<vmem>>, vector<32x4xbf16>
      %cst_39 = arith.constant dense<0.000000e+00> : vector<2x4xf32>
      %56 = tpu.matmul %54, %55, %cst_39 {dimension_numbers = #tpu.dot_dimension_numbers<[1], [0], [0], [1], [0, 0, 1, 1], [], []>} : vector<2x32xbf16>, vector<32x4xbf16>, vector<2x4xf32> -> vector<2x4xf32>
      %c0_40 = arith.constant 0 : index
      %c0_41 = arith.constant 0 : index
      %57 = vector.load %arg13[%c0_40, %c0_41] : memref<1x4xf32, #tpu.memory_space<vmem>>, vector<1x4xf32>
      %58 = vector.broadcast %57 : vector<1x4xf32> to vector<2x4xf32>
      %59 = arith.addf %56, %58 : vector<2x4xf32>
      %cst_42 = arith.constant dense<0xFF800000> : vector<2xf32>
      %60 = vector.multi_reduction <maximumf>, %59, %cst_42 [1] : vector<2x4xf32> to vector<2xf32>
      %61 = vector.shape_cast %60 : vector<2xf32> to vector<2x1xf32>
      %62 = vector.broadcast %61 : vector<2x1xf32> to vector<2x4xf32>
      %63 = arith.subf %59, %62 : vector<2x4xf32>
      %64 = math.exp %63 : vector<2x4xf32>
      %cst_43 = arith.constant dense<0.000000e+00> : vector<2xf32>
      %65 = vector.multi_reduction <add>, %64, %cst_43 [1] : vector<2x4xf32> to vector<2xf32>
      %66 = vector.shape_cast %65 : vector<2xf32> to vector<2x1xf32>
      %67 = math.log %66 : vector<2x1xf32>
      %68 = arith.addf %61, %67 : vector<2x1xf32>
      %69 = vector.broadcast %68 : vector<2x1xf32> to vector<2x4xf32>
      %70 = arith.subf %59, %69 : vector<2x4xf32>
      %c0_44 = arith.constant 0 : index
      %c0_45 = arith.constant 0 : index
      %71 = vector.load %arg14[%c0_44, %c0_45] : memref<2x4xf32, #tpu.memory_space<vmem>>, vector<2x4xf32>
      tpu.vector_store %arg14[%c0_44, %c0_45], %70 {strides = array<i32>} : memref<2x4xf32, #tpu.memory_space<vmem>>, vector<2x4xf32>,
    } else {
    }
    return
  }
  func.func @transform_0(%arg0: i32, %arg1: i32) -> i32 {
    %c0_i32 = arith.constant 0 : i32
    %c0_i32_0 = arith.constant 0 : i32
    return %c0_i32 : i32
  }
  func.func @transform_1(%arg0: i32, %arg1: i32) -> (i32, i32) {
    %c0_i32 = arith.constant 0 : i32
    %c0_i32_0 = arith.constant 0 : i32
    %c0_i32_1 = arith.constant 0 : i32
    return %c0_i32, %c0_i32_0 : i32, i32
  }
  func.func @transform_2(%arg0: i32, %arg1: i32) -> (i32, i32) {
    %c0_i32 = arith.constant 0 : i32
    %c0_i32_0 = arith.constant 0 : i32
    return %arg1, %c0_i32 : i32, i32
  }
  func.func @transform_3(%arg0: i32, %arg1: i32) -> (i32, i32) {
    %c0_i32 = arith.constant 0 : i32
    %c0_i32_0 = arith.constant 0 : i32
    %c0_i32_1 = arith.constant 0 : i32
    return %c0_i32, %c0_i32_0 : i32, i32
  }
  func.func @transform_4(%arg0: i32, %arg1: i32) -> (i32, i32, i32) {
    %c0_i32 = arith.constant 0 : i32
    %c0_i32_0 = arith.constant 0 : i32
    %c0_i32_1 = arith.constant 0 : i32
    return %arg0, %c0_i32, %c0_i32_0 : i32, i32, i32
  }
  func.func @transform_5(%arg0: i32, %arg1: i32) -> (i32, i32, i32) {
    %c0_i32 = arith.constant 0 : i32
    %c0_i32_0 = arith.constant 0 : i32
    %c0_i32_1 = arith.constant 0 : i32
    return %arg0, %c0_i32, %c0_i32_0 : i32, i32, i32
  }
  func.func @transform_6(%arg0: i32, %arg1: i32) -> (i32, i32, i32) {
    %c0_i32 = arith.constant 0 : i32
    %c0_i32_0 = arith.constant 0 : i32
    %c0_i32_1 = arith.constant 0 : i32
    return %arg0, %c0_i32, %c0_i32_0 : i32, i32, i32
  }
  func.func @transform_7(%arg0: i32, %arg1: i32) -> (i32, i32, i32) {
    %c0_i32 = arith.constant 0 : i32
    %c0_i32_0 = arith.constant 0 : i32
    %c0_i32_1 = arith.constant 0 : i32
    return %arg0, %c0_i32, %c0_i32_0 : i32, i32, i32
  }
  func.func @transform_8(%arg0: i32, %arg1: i32) -> (i32, i32) {
    %c0_i32 = arith.constant 0 : i32
    %c0_i32_0 = arith.constant 0 : i32
    %c0_i32_1 = arith.constant 0 : i32
    return %c0_i32, %c0_i32_0 : i32, i32
  }
  func.func @transform_9(%arg0: i32, %arg1: i32) -> (i32, i32) {
    %c0_i32 = arith.constant 0 : i32
    %c0_i32_0 = arith.constant 0 : i32
    %c0_i32_1 = arith.constant 0 : i32
    return %c0_i32, %c0_i32_0 : i32, i32
  }
  func.func @transform_10(%arg0: i32, %arg1: i32) -> (i32, i32) {
    %c0_i32 = arith.constant 0 : i32
    %c0_i32_0 = arith.constant 0 : i32
    %c0_i32_1 = arith.constant 0 : i32
    return %c0_i32, %c0_i32_0 : i32, i32
  }
  func.func @transform_11(%arg0: i32, %arg1: i32) -> (i32, i32) {
    %c0_i32 = arith.constant 0 : i32
    %c0_i32_0 = arith.constant 0 : i32
    %c0_i32_1 = arith.constant 0 : i32
    return %c0_i32, %c0_i32_0 : i32, i32
  }
  func.func @transform_12(%arg0: i32, %arg1: i32) -> (i32, i32) {
    %c0_i32 = arith.constant 0 : i32
    %c0_i32_0 = arith.constant 0 : i32
    %c0_i32_1 = arith.constant 0 : i32
    return %c0_i32, %c0_i32_0 : i32, i32
  }
}

</mosaic_0001>

<bundles_post_ra>
// kernel: tpu_custom_call.1
= control target key start
LH: loop header
LB: loop body
LE: loop exit
PB: predicated region body
PF: predicated region fallthrough
CT: control target
= control target key end

     0   :  { %s2257_s0 = inlined_call_operand.hbm [shape: f32[3], index: 0, kind: input, shape index: {}]   ;;  %s2258_s1 = inlined_call_operand.vmem [shape: bf16[32,32], index: 1, kind: input, shape index: {}]   ;;  %s2259_s2 = inlined_call_operand.hbm [shape: bf16[32,32], index: 2, kind: input, shape index: {}]   ;;  %s2260_s3 = inlined_call_operand.vmem [shape: f32[2,32], index: 3, kind: input, shape index: {}]   ;;  %s2261_s4 = inlined_call_operand.vmem [shape: bf16[3,32,32], index: 4, kind: input, shape index: {}]   ;;  %s2262_s5 = inlined_call_operand.vmem [shape: f32[3,1,32], index: 5, kind: input, shape index: {}]   ;;  %s2263_s6 = inlined_call_operand.hbm [shape: bf16[3,32,32], index: 6, kind: input, shape index: {}]   ;;  %s2264_s7 = inlined_call_operand.vmem [shape: f32[3,1,32], index: 7, kind: input, shape index: {}]   ;;  %s2265_s8 = inlined_call_operand.vmem [shape: bf16[96,32], index: 8, kind: input, shape index: {}]   ;;  %s2266_s9 = inlined_call_operand.hbm [shape: f32[1,32], index: 9, kind: input, shape index: {}]   ;;  %s2267_s10 = inlined_call_operand.vmem [shape: bf16[32,4], index: 10, kind: input, shape index: {}]   ;;  %s2268_s11 = inlined_call_operand.vmem [shape: f32[1,4], index: 11, kind: input, shape index: {}]   ;;  %s2269_s12 = inlined_call_operand.hbm [shape: f32[2,4], index: 12, kind: output, shape index: {}]  }
   0x1   :  { %2277 = sst [smem:[#allocation24_spill]] %s2257_s0 }
   0x2   :  { %2278 = sst [smem:[#allocation25_spill]] %s2258_s1 }
   0x3   :  { %2279 = sst [smem:[#allocation26_spill]] %s2259_s2 }
   0x4   :  { %2280 = sst [smem:[#allocation27_spill]] %s2260_s3 }
   0x5   :  { %2281 = sst [smem:[#allocation28_spill]] %s2261_s4 }
   0x6   :  { %2282 = sst [smem:[#allocation29_spill]] %s2263_s6 }
   0x7   :  { %2283 = sst [smem:[#allocation30_spill]] %s2264_s7 }
   0x8   :  { %2284 = sst [smem:[#allocation31_spill]] %s2265_s8 }
   0x9   :  { %2285 = sst [smem:[#allocation32_spill]] %s2266_s9 }
   0xa   :  { %2286 = sst [smem:[#allocation33_spill]] %s2267_s10 }
   0xb   :  { %2287 = sst [smem:[#allocation34_spill]] %s2268_s11 }
   0xc   :  { %2288 = sst [smem:[#allocation35_spill]] %s2269_s12 }
   0xd   :  { %17 = vsyncpa [#allocation8], 0 }
   0xe   :  { %18 = vsyncpa [#allocation6], 0 }
   0xf   :  { %20 = vsyncpa [#allocation6 + $0x1], 0 }
  0x10   :  { %21 = vsyncpa [#allocation11], 0 }
  0x11   :  { %23 = vsyncpa [#allocation11 + $0x1], 0 }
  0x12   :  { %24 = vsyncpa [#allocation7], 0  ;;  %s1878_s21 = smov 0   ;;  %s1880_s22 = smov 0  }
  0x13   :  { %s1882_s23 = smov 0   ;;  %s1884_s24 = smov 0  }
  0x14   :  { %s1886_s25 = smov 0   ;;  %s1888_s26 = smov 0  }
  0x15   :  { %s1890_s27 = smov 0   ;;  %s1892_s28 = smov 0  }
  0x16   :  { %s1894_s29 = smov 0   ;;  %s1896_s30 = smov 0  }
  0x17   :  { %s1898_s13 = smov 0  }
  0x18 LB: > { %2289 = sst [smem:[#allocation19_spill]] %s1784_s26  ;;  %s1930_s14 = sadd.s32 4294967295, %s1804_s13   ;;  %s1804_s13 = sphi %s1898_s13, %s30_s13   ;;  %s1800_s30 = sphi %s1896_s30, %s2328_s30   ;;  %s1796_s29 = sphi %s1894_s29, %s2318_s29   ;;  %s1792_s28 = sphi %s1892_s28, %s2327_s28   ;;  %s1788_s27 = sphi %s1890_s27, %s2326_s27   ;;  %s1784_s26 = sphi %s1888_s26, %s2325_s26   ;;  %s1780_s25 = sphi %s1886_s25, %s2324_s25   ;;  %s1776_s24 = sphi %s1884_s24, %s2323_s24   ;;  %s1772_s23 = sphi %s1882_s23, %s2322_s23   ;;  %s1768_s22 = sphi %s1880_s22, %s2321_s22   ;;  %s1764_s21 = sphi %s1878_s21, %s2320_s21  }
  0x19   : > { %2290 = sst [smem:[#allocation20_spill]] %s1796_s29  ;;  %p104_p0 = scmp.ne.s32.totalorder %s1780_s25, %s1776_s24 }
  0x1a   : > { %p105_p1 = scmp.eq.s32.totalorder %s1930_s14, 0  ;;  %p203_p2 = scmp.ne.s32.totalorder %s1768_s22, %s1764_s21 }
  0x1b   : > { %p1243_p3 = scmp.ge.s32.totalorder %s1804_s13, 1  ;;  %p345_p4 = scmp.lt.s32.totalorder %s1804_s13, 7 }
  0x1c   : > { %p1939_p5 = por %p105_p1, %p104_p0  ;;  %p1945_p6 = por %p203_p2, %p105_p1 }
  0x1d   : > { %p1949_p7 = pnand %p1243_p3, %p345_p4  ;;  %s2294_s9 = sld [smem:[#allocation32_spill]] }
  0x1e   : > { %s1806_s21 = smov [#allocation12]   ;;  %s2295_s0 = sld [smem:[#allocation24_spill]] }
  0x1f   : > { %p1443_p8 = pneg %p1949_p7  ;;  %s378_s24 = sshll.u32 %s1806_s21, 4  ;;  %s379_s24 = int_to_ptr.vmem [resolvable:$true] %s378_s24 }
  0x20   : > { %s39_s11 = sadd.s32 1, %s1796_s29  ;;  %s91_s10 = sadd.s32 1, %s1784_s26 }
  0x21   : > { %p1444_p9 = pnand %p1443_p8, %p105_p1  ;;  %p1965_p10 = scmp.ge.s32.totalorder %s39_s11, 2 }
  0x22   : > { %p98_p11 = scmp.ne.s32.totalorder %s1784_s26, %s1780_s25  ;;  %p99_p12 = scmp.eq.s32.totalorder %s1804_s13, 0 }
  0x23   : > { %s376_s20 = sshll.u32 %s2294_s9, 4  ;;  %s1807_s9 = smov [#allocation5]   ;;  %s377_s20 = int_to_ptr.hbm [resolvable:$true] %s376_s20 }
  0x24   : > { %1449 = dma.hbm_to_vmem [thread:$0]  (!%p1444_p9), %s377_s20, 16, %s379_s24, [#allocation11]  }
  0x25   : > { %s357_s19 = sshll.u32 %s2295_s0, 4  ;;  %p1459_p13 = scmp.lt.s32.totalorder %s1804_s13, 6  ;;  %s358_s19 = int_to_ptr.hbm [resolvable:$true] %s357_s19 }
  0x26   : > { %1446 = dma.hbm_to_smem (!%p1444_p9), %s358_s19, 16, %s1807_s9, [#allocation8]  }
  0x27   : > { %s2330_s11 = smov (%p1965_p10, %s39_s11), 0  ;;  %p1979_p0 = por %p99_p12, %p98_p11 }
  0x28   : > { %2297 = sst [smem:[#allocation21_spill]] %s2330_s11  ;;  %s395_s9 = sand.u32 1, %s1784_s26  }
  0x29   : > { %s88_s20 = ssub.s32 %s1796_s29, %s2330_s11  ;;  %s1247_s21 = sshll.u32 %s395_s9, 3 }
  0x2a   : > { %p89_p2 = scmp.eq.s32.totalorder %s88_s20, 0  ;;  %s1376_s24 = sshll.u32 %s1796_s29, 3 }
  0x2b   : > { %s2300_s2 = sld [smem:[#allocation26_spill]]  ;;  %s399_s1 = scalar_lea.vmem [#allocation9], %s1247_s21 }
  0x2c   : > { %s1988_s18 = scalar_select %p89_p2, %s1784_s26, %s91_s10  }
  0x2d   : > { %s407_s7 = sshll.u32 %s399_s1, 4  ;;  %p1451_p3 = pnand %p1459_p13, %p1979_p0  ;;  %s408_s7 = int_to_ptr.vmem [resolvable:$true] %s407_s7 }
  0x2e   : > { %2299 = sst [smem:[#allocation22_spill]] %s1988_s18  ;;  %s396_s20 = scalar_lea.sflag [#allocation6], %s395_s9 }
  0x2f   : > { %s1808_s10 = smov 64   ;;  %s1809_s29 = smov 4  }
  0x30   : > { %s190_s18 = sadd.s32 1, %s1772_s23  ;;  %s42_s0 = sadd.s32 1, %s1800_s30 }
  0x31   : > { %s404_s3 = scalar_lea.hbm %s2300_s2, %s1376_s24  ;;  %p197_p4 = scmp.ne.s32.totalorder %s1772_s23, %s1768_s22 }
  0x32   : > { %s405_s11 = sshll.u32 %s404_s3, 4  ;;  %s2332_s0 = smov (!%p1965_p10, %s42_s0), %s1800_s30  ;;  %s406_s11 = int_to_ptr.hbm [resolvable:$true] %s405_s11 }
  0x33   : > { %1453 = dma.hbm_to_vmem [thread:$0]  (!%p1451_p3), %s406_s11, 128, %s408_s7, %s396_s20, %s1808_s10, %s1808_s10, %s1809_s29  }
  0x34   : > { %p2006_p8 = por %p197_p4, %p99_p12  ;;  %s431_s3 = sand.u32 1, %s1804_s13  }
  0x35   : > { %p44_p9 = scmp.ge.s32.totalorder %s2332_s0, 3  ;;  %s433_s12 = sand.u32 1, %s1772_s23  }
  0x36   : > { %s1377_s9 = sshll.u32 %s1800_s30, 4  ;;  %s1250_s7 = sshll.u32 %s433_s12, 4 }
  0x37   : > { %s2334_s0 = smov (%p44_p9, %s2332_s0), 0  ;;  %s2303_s6 = sld [smem:[#allocation29_spill]] }
  0x38   : > { %2302 = sst [smem:[#allocation23_spill]] %s2334_s0  ;;  %s187_s24 = ssub.s32 %s1800_s30, %s2334_s0 }
  0x39   : > { %p188_p10 = scmp.eq.s32.totalorder %s187_s24, 0  ;;  %s435_s20 = scalar_lea.vmem [#allocation10], %s1250_s7 }
  0x3a   : > { %s443_s2 = sshll.u32 %s435_s20, 4  ;;  %p1454_p11 = pnand %p1459_p13, %p2006_p8  ;;  %s444_s2 = int_to_ptr.vmem [resolvable:$true] %s443_s2 }
  0x3b   : > { %s2021_s26 = scalar_select %p188_p10, %s1772_s23, %s190_s18  }
  0x3c   : > { %s432_s4 = scalar_lea.sflag [#allocation11], %s431_s3  ;;  %461 = sbr.rel (%p1949_p7) target bundleno = 1940 (0x794), region = 68 }
  0x3d   : > { %s440_s8 = scalar_lea.hbm %s2303_s6, %s1377_s9 }
  0x3e   : > { %s441_s19 = sshll.u32 %s440_s8, 4  ;;  %s442_s19 = int_to_ptr.hbm [resolvable:$true] %s441_s19 }
  0x3f   : > { %1456 = dma.hbm_to_vmem [thread:$0]  (!%p1454_p11), %s442_s19, 256, %s444_s2, %s432_s4, %s1808_s10, %s1808_s10, %s1809_s29  }
  0x41   : > { %1743 = dma.done.wait (%p105_p1), [#allocation8], 16  }
  0x42   : > { %1745 = vsyncadd (%p105_p1), [#allocation8], 4294967280  ;;  %s468_s12 = sand.u32 1, %s1780_s25  }
  0x43   : > { %s1255_s18 = sshll.u32 %s468_s12, 3  ;;  %s469_s9 = scalar_lea.sflag [#allocation6], %s468_s12 }
  0x44   : > { %s2034_s7 = scalar_lea.vmem [#allocation9], %s1255_s18 }
  0x45   : > { %1747 = dma.done.wait (%p1939_p5), %s469_s9, 128  }
  0x46   : > { %1749 = vsyncadd (%p1939_p5), %s469_s9, 4294967168  ;;  %s478_s2 = sand.u32 1, %s1930_s14   ;;  %s480_s4 = sand.u32 1, %s1768_s22  }
  0x47   : > { %s1256_s29 = sshll.u32 %s480_s4, 4  ;;  %s479_s17 = scalar_lea.sflag [#allocation11], %s478_s2 }
  0x48   : > { %s2042_s10 = scalar_lea.vmem [#allocation10], %s1256_s29 }
  0x49   : > { %1751 = dma.done.wait (%p1945_p6), %s479_s17, 256  }
  0x4a   : > { %1753 = vsyncadd (%p1945_p6), %s479_s17, 4294967040 }
  0x4b   : > { %1755 = dma.done.wait (%p105_p1), [#allocation11], 16  }
  0x4c   : > { %1757 = vsyncadd (%p105_p1), [#allocation11], 4294967280 }
  0x4d   : > { %493 = sfence }
  0x4e   : > { %p542_p5 = scmp.lt.s32.totalorder %s1792_s28, 2  ;;  %p554_p7 = scmp.eq.s32.totalorder %s1792_s28, 0 }
  0x4f   : > { %p555_p12 = scmp.eq.s32.totalorder %s1788_s27, 0  ;;  %s2304_s24 = sld [smem:[#allocation28_spill]] }
  0x50   : > { %s2056_s15 = scalar_select %p542_p5, %s1792_s28, 2 }
  0x51   : > { %p556_p6 = pnand %p555_p12, %p554_p7  ;;  %s2305_s18 = sld [smem:[#allocation30_spill]] }
  0x52   : > { %s1378_s16 = sshll.u32 %s2056_s15, 4  ;;  %s549_s11 = scalar_lea.vmem %s2262_s5, %s2056_s15 }
  0x53   : > { %559 = sbr.rel (%p556_p6) target bundleno = 94 (0x5e), region = 88  ;;  %s2306_s29 = sld [smem:[#allocation25_spill]] (!%p556_p6) }
  0x55   : > { %s546_s19 = scalar_lea.vmem %s2304_s24, %s1378_s16 }
  0x57   : > { %s552_s9 = scalar_lea.vmem %s2305_s18, %s2056_s15 }
  0x58   : > { %vm564_vm0 = vcmask 257024  }
  0x59   : > { %s2307_s17 = smov %s2306_s29  ;;  %v560_v0 = vld [vmem:[%s2306_s29] sm:$0xf] }
  0x5a   : > { %v561_v1 = vld [vmem:[%s2307_s17 + $0x4] sm:$0xf]  ;;  %565 = vst.msk [vmem:[#allocation2] sm:$0xf] %vm564_vm0, %v560_v0  ;;  %v562_v2 = vld [vmem:[%s2307_s17 + $0x8] sm:$0xf] }
  0x5b   : > { %v563_v3 = vld [vmem:[%s2307_s17 + $0xc] sm:$0xf]  ;;  %566 = vst.msk [vmem:[#allocation2 + $0x4] sm:$0xf] %vm564_vm0, %v561_v1 }
  0x5c   : > { %567 = vst.msk [vmem:[#allocation2 + $0x8] sm:$0xf] %vm564_vm0, %v562_v2 }
  0x5d   : > { %568 = vst.msk [vmem:[#allocation2 + $0xc] sm:$0xf] %vm564_vm0, %v563_v3 }
  0x5e PF: > { %s2083_s6 = sld [smem:[#allocation5 + %s1792_s28]]  ;;  %v2085_v4 = vld [vmem:[%s546_s19] sm:$0xf]  ;;  %s1260_s0 = sshll.u32 %s1788_s27, 4  ;;  %v2088_v6 = vld [vmem:[%s546_s19] sm:$0xf0] }
  0x5f   : > { %v1281_v5 = vld [vmem:[%s546_s19] sm:$0xf]  ;;  %v1380_v7 = vld [vmem:[%s546_s19] sm:$0xf0]  ;;  %v2090_v8 = vld [vmem:[%s546_s19 + $0x8] sm:$0xf] }
  0x60   : > { %v1285_v9 = vld [vmem:[%s546_s19 + $0x8] sm:$0xf]  ;;  %v2092_v10 = vld [vmem:[%s546_s19 + $0x8] sm:$0xf0]  ;;  %v2094_v12 = vld [vmem:[%s549_s11] sm:$0x1] }
  0x61   : > { %v1382_v11 = vld [vmem:[%s546_s19 + $0x8] sm:$0xf0]  ;;  %v2097_v13 = vld [vmem:[%s2042_s10] sm:$0xf]  ;;  %v2109_v19 = vld [vmem:[%s2042_s10 + $0x8] sm:$0xf0] }
  0x62   : > { %v1290_v14 = vld [vmem:[%s2042_s10] sm:$0xf]  ;;  %v2101_v15 = vld [vmem:[%s2042_s10] sm:$0xf0]  ;;  %v2105_v17 = vld [vmem:[%s2042_s10 + $0x8] sm:$0xf] }
  0x63   : > { %v1384_v16 = vld [vmem:[%s2042_s10] sm:$0xf0]  ;;  %v1294_v18 = vld [vmem:[%s2042_s10 + $0x8] sm:$0xf]  ;;  %v1386_v20 = vld [vmem:[%s2042_s10 + $0x8] sm:$0xf0] }
  0x64   : > { %v2117_v21 = vld [vmem:[%s552_s9] sm:$0x1]  ;;  %v2120_v22 = vld [vmem:[%s2034_s7] sm:$0xf]  ;;  %v2124_v24 = vld [vmem:[%s2034_s7] sm:$0xf0] }
  0x65   : > { %v1268_v23 = vld [vmem:[%s2034_s7] sm:$0xf]  ;;  %v1388_v25 = vld [vmem:[%s2034_s7] sm:$0xf0]  ;;  %p583_p1 = scmp.lt.s32.totalorder %s1792_s28, 0  ;;  %s584_s11 = ssub.s32 0, %s1792_s28 }
  0x66   : > { %s1261_s19 = smin.u32 %s1792_s28, %s584_s11 }
  0x67   : > { %s586_s12 = sand.u32 1, %s1261_s19  }
  0x68   : > { %s587_s18 = ssub.s32 0, %s586_s12 }
  0x69   : > { %s2336_s18 = smov (!%p583_p1, %s587_s18), %s586_s12 }
  0x6a   : > { %p1263_p13 = scmp.lt.s32.totalorder %s2336_s18, 0  ;;  %s593_s10 = sadd.s32 2, %s2336_s18 }
  0x6c   : > { %s2338_s10 = smov (!%p1263_p13, %s593_s10), %s2336_s18 }
  0x6d   : > { %p1264_p0 = scmp.ne.s32.totalorder %s2338_s10, 0 }
  0x6e   : > { %s2136_s7 = sshra.s32 (!%p1264_p0), %s1260_s0, 3  ;;  %s611_s2 = sadd.f32 (!%p1264_p0), 1.0, %s2083_s6 }
  0x6f   : > { %598 = sbr.rel (%p1264_p0) target bundleno = 692 (0x2b4), region = 92  ;;  %s1265_s15 = sshll.u32 (!%p1264_p0), %s2136_s7, 2 }
  0x70   : > { %s606_s9 = scalar_lea.vmem (!%p1264_p0), [#allocation2], %s1265_s15  ;;  %s723_s4 = scalar_lea.vmem (!%p1264_p0), [#allocation3], %s1265_s15 }
  0x71   : > { %p1298_p2 = scmp.ne.s32.totalorder (!%p1264_p0), %s1788_s27, 1 }
  0x74   : > { %v1390_v26 = vld [vmem:[#allocation2 + $0x8] sm:$0xff]  ;;  %v1389_v27 = vld [vmem:[#allocation2] sm:$0xff]  ;;  %v1269_v28 = vor.u32 %v1388_v25, %v1268_v23  ;;  %vm632_vm1 = vcmask 261120   ;;  %v1286_v29 = vor.u32 %v1382_v11, %v1285_v9  ;;  %v1282_v30 = vor.u32 %v1380_v7, %v1281_v5  ;;  %s2309_s3 = sld [smem:[#allocation27_spill]] (!%p1298_p2)  ;;  %s1300_s16 = sshll.u32 (!%p1298_p2), %s1792_s28, 1 }
  0x75   : > { %642 = vmatpush.bf16.msra.mxu0 %v1390_v26  ;;  %v1402_v31 = vld [vmem:[%s606_s9] sm:$0xff]   ;;  %v612_v35 = vstv %s611_s2  ;;  %v1295_v42 = vor.u32 %v1386_v20, %v1294_v18  ;;  %v1291_v43 = vor.u32 %v1384_v16, %v1290_v14  ;;  %v652_v45 = vperm.slane %v2094_v12, 0  ;;  %s764_s21 = scalar_lea.vmem (!%p1298_p2), [#allocation4], %s1300_s16 }
  0x76   : > { %675 = vmatpush.bf16.msra.mxu1 %v1286_v29  ;;  %v1403_v33 = vunpack.c.l.bf16 %v1402_v31  ;;  %v1404_v34 = vunpack.c.h.bf16 %v1402_v31  ;;  %v687_v52 = vperm.slane %v2117_v21, 0  ;;  %vm724_vm2 = vcmask 257024  }
  0x77   : > { %710 = vmatpush.bf16.msra.mxu2 %v1295_v42 }
  0x78   : > { %v613_v36 = vmul.f32 %v1403_v33, %v612_v35  ;;  %v614_v37 = vmul.f32 %v1404_v34, %v612_v35 }
  0x79   : > { %643 = vmatpush.bf16.msra.mxu0 %v1389_v27 }
  0x7a   : > { %676 = vmatpush.bf16.msra.mxu1 %v1282_v30 }
  0x7b   : > { %711 = vmatpush.bf16.msra.mxu2 %v1291_v43 }
  0x7c   : > { %1278 = vmatmul.msk.bf16.vlgmr.msra.gmra.mxu0 %vm632_vm1, %v1269_v28 }
  0xf9   : > { %v645_v32 = vpop.f32.mrf.mxu0 }
  0xfa   : > { %v646_v39 = vadd.f32 %v645_v32, %v613_v36 }
 0x101   : > { %v647_v38 = vpop.f32.mrf.mxu0 }
 0x102   : > { %v648_v40 = vadd.f32 %v647_v38, %v614_v37 }
 0x104   : > { %v650_v41 = vpack.c.bf16 %v648_v40, %v646_v39 }
 0x106   : > { %1287 = vmatmul.msk.bf16.vlgmr.msra.gmra.mxu1 %vm632_vm1, %v650_v41 }
 0x183   : > { %v678_v44 = vpop.f32.mrf.mxu1 }
 0x184   : > { %v679_v46 = vadd.f32 %v678_v44, %v652_v45 }
 0x186   : > { %v683_v49 = vmax.f32 %v679_v46, 0.0 }
 0x18b   : > { %v680_v47 = vpop.f32.mrf.mxu1 }
 0x18c   : > { %v681_v48 = vadd.f32 %v680_v47, %v652_v45 }
 0x18e   : > { %v684_v50 = vmax.f32 %v681_v48, 0.0 }
 0x190   : > { %v685_v51 = vpack.c.bf16 %v684_v50, %v683_v49 }
 0x192   : > { %1296 = vmatmul.msk.bf16.vlgmr.msra.gmra.mxu2 %vm632_vm1, %v685_v51 }
 0x215   : > { %v713_v53 = vpop.f32.mrf.mxu2 }
 0x216   : > { %v714_v54 = vadd.f32 %v713_v53, %v687_v52 }
 0x218   : > { %v718_v55 = vmax.f32 %v714_v54, 0.0 }
 0x21a   : > { %v720_v56 = vpack.c.bf16 %v718_v55, %v718_v55 }
 0x21c   : > { %725 = vst.msk [vmem:[%s723_s4] sm:$0xf] %vm724_vm2, %v720_v56 }
 0x21d   : > { %v715_v57 = vpop.f32.mrf.mxu2 }
 0x21e   : > { %v716_v58 = vadd.f32 %v715_v57, %v687_v52 }
 0x220   : > { %v719_v59 = vmax.f32 %v716_v58, 0.0  ;;  %730 = sbr.rel (%p1298_p2) target bundleno = 692 (0x2b4), region = 96 }
 0x222   : > { %v721_v60 = vpack.c.bf16 %v719_v59, %v719_v59 }
 0x224   : > { %726 = vst.msk [vmem:[%s723_s4 + $0x4] sm:$0xf] %vm724_vm2, %v721_v60 }
 0x225   : > { %v731_v3 = vld [vmem:[%s2309_s3] sm:$0x3]  ;;  %vm765_vm3 = vcmask 254976  }
 0x22b   : > { %v1425_v61 = vld [vmem:[#allocation3 + $0x8] sm:$0xff]   ;;  %v1406_v62 = vld [vmem:[#allocation3] sm:$0xff]  }
 0x22c   : > { %v1412_v63 = vunpack.c.h.bf16 %v1425_v61  ;;  %v1411_v0 = vunpack.c.l.bf16 %v1425_v61  ;;  %v1408_v1 = vunpack.c.h.bf16 %v1406_v62  ;;  %v1407_v2 = vunpack.c.l.bf16 %v1406_v62 }
 0x22e   : > { %755 = vmatpush.msra.mxu0 %v1412_v63 }
 0x230   : > { %756 = vmatpush.msra.mxu0 %v1411_v0 }
 0x232   : > { %757 = vmatpush.msra.mxu0 %v1408_v1 }
 0x234   : > { %758 = vmatpush.msra.mxu0 %v1407_v2 }
 0x235   : > { %1299 = vmatmul.msk.f32.vlgmr.msra.gmra.mxu0 %vm632_vm1, %v731_v3 }
 0x2b2   : > { %v760_v5 = vpop.f32.mrf.mxu0 }
 0x2b3   : > { %766 = vst.msk [vmem:[%s764_s21] sm:$0x3] %vm765_vm3, %v760_v5 }
 0x2b4 PF: > { %p1301_p3 = scmp.eq.s32.totalorder %s2338_s10, 0 }
 0x2b5   : > { %s2164_s8 = sshra.s32 (!%p1301_p3), %s1260_s0, 3  ;;  %s783_s11 = sadd.f32 (!%p1301_p3), 1.0, %s2083_s6 }
 0x2b6   : > { %770 = sbr.rel (%p1301_p3) target bundleno = 1275 (0x4fb), region = 100  ;;  %s1302_s24 = sshll.u32 (!%p1301_p3), %s2164_s8, 2 }
 0x2b7   : > { %s778_s20 = scalar_lea.vmem (!%p1301_p3), [#allocation3], %s1302_s24  ;;  %s895_s6 = scalar_lea.vmem (!%p1301_p3), [#allocation2], %s1302_s24 }
 0x2b8   : > { %p1335_p4 = scmp.ne.s32.totalorder (!%p1301_p3), %s1788_s27, 1 }
 0x2bb   : > { %v1392_v7 = vld [vmem:[#allocation3 + $0x8] sm:$0xff]  ;;  %v1391_v9 = vld [vmem:[#allocation3] sm:$0xff]  ;;  %v1306_v11 = vor.u32 %v2124_v24, %v2120_v22  ;;  %vm804_vm4 = vcmask 261120   ;;  %v1323_v14 = vor.u32 %v2092_v10, %v2090_v8  ;;  %v1319_v16 = vor.u32 %v2088_v6, %v2085_v4  ;;  %v1414_v18 = vld [vmem:[%s778_s20] sm:$0xff]   ;;  %s2310_s12 = sld [smem:[#allocation27_spill]] (!%p1335_p4)  ;;  %s1337_s18 = sshll.u32 (!%p1335_p4), %s1792_s28, 1 }
 0x2bc   : > { %814 = vmatpush.bf16.msra.mxu0 %v1392_v7  ;;  %v1415_v22 = vunpack.c.l.bf16 %v1414_v18  ;;  %v1416_v23 = vunpack.c.h.bf16 %v1414_v18  ;;  %v784_v24 = vstv %s783_s11  ;;  %v1332_v27 = vor.u32 %v2109_v19, %v2105_v17  ;;  %s936_s10 = scalar_lea.vmem (!%p1335_p4), [#allocation4], %s1337_s18 }
 0x2bd   : > { %847 = vmatpush.bf16.msra.mxu1 %v1323_v14  ;;  %v1328_v28 = vor.u32 %v2101_v15, %v2097_v13  ;;  %v824_v30 = vperm.slane %v2094_v12, 0  ;;  %v859_v37 = vperm.slane %v2117_v21, 0  ;;  %vm896_vm5 = vcmask 257024  }
 0x2be   : > { %v785_v8 = vmul.f32 %v1415_v22, %v784_v24  ;;  %v786_v10 = vmul.f32 %v1416_v23, %v784_v24  ;;  %882 = vmatpush.bf16.msra.mxu2 %v1332_v27 }
 0x2c0   : > { %815 = vmatpush.bf16.msra.mxu0 %v1391_v9 }
 0x2c1   : > { %848 = vmatpush.bf16.msra.mxu1 %v1319_v16 }
 0x2c2   : > { %883 = vmatpush.bf16.msra.mxu2 %v1328_v28 }
 0x2c3   : > { %1315 = vmatmul.msk.bf16.vlgmr.msra.gmra.mxu0 %vm804_vm4, %v1306_v11 }
 0x340   : > { %v817_v20 = vpop.f32.mrf.mxu0 }
 0x341   : > { %v818_v26 = vadd.f32 %v817_v20, %v785_v8 }
 0x348   : > { %v819_v25 = vpop.f32.mrf.mxu0 }
 0x349   : > { %v820_v4 = vadd.f32 %v819_v25, %v786_v10 }
 0x34b   : > { %v822_v6 = vpack.c.bf16 %v820_v4, %v818_v26 }
 0x34d   : > { %1324 = vmatmul.msk.bf16.vlgmr.msra.gmra.mxu1 %vm804_vm4, %v822_v6 }
 0x3ca   : > { %v850_v29 = vpop.f32.mrf.mxu1 }
 0x3cb   : > { %v851_v31 = vadd.f32 %v850_v29, %v824_v30 }
 0x3cd   : > { %v855_v34 = vmax.f32 %v851_v31, 0.0 }
 0x3d2   : > { %v852_v32 = vpop.f32.mrf.mxu1 }
 0x3d3   : > { %v853_v33 = vadd.f32 %v852_v32, %v824_v30 }
 0x3d5   : > { %v856_v35 = vmax.f32 %v853_v33, 0.0 }
 0x3d7   : > { %v857_v36 = vpack.c.bf16 %v856_v35, %v855_v34 }
 0x3d9   : > { %1333 = vmatmul.msk.bf16.vlgmr.msra.gmra.mxu2 %vm804_vm4, %v857_v36 }
 0x45c   : > { %v885_v17 = vpop.f32.mrf.mxu2 }
 0x45d   : > { %v886_v19 = vadd.f32 %v885_v17, %v859_v37 }
 0x45f   : > { %v890_v38 = vmax.f32 %v886_v19, 0.0 }
 0x461   : > { %v892_v13 = vpack.c.bf16 %v890_v38, %v890_v38 }
 0x463   : > { %897 = vst.msk [vmem:[%s895_s6] sm:$0xf] %vm896_vm5, %v892_v13 }
 0x464   : > { %v887_v15 = vpop.f32.mrf.mxu2 }
 0x465   : > { %v888_v12 = vadd.f32 %v887_v15, %v859_v37 }
 0x467   : > { %v891_v39 = vmax.f32 %v888_v12, 0.0  ;;  %902 = sbr.rel (%p1335_p4) target bundleno = 1275 (0x4fb), region = 104 }
 0x469   : > { %v893_v40 = vpack.c.bf16 %v891_v39, %v891_v39 }
 0x46b   : > { %898 = vst.msk [vmem:[%s895_s6 + $0x4] sm:$0xf] %vm896_vm5, %v893_v40 }
 0x46c   : > { %v903_v46 = vld [vmem:[%s2310_s12] sm:$0x3]  ;;  %vm937_vm6 = vcmask 254976  }
 0x472   : > { %v1426_v41 = vld [vmem:[#allocation2 + $0x8] sm:$0xff]   ;;  %v1418_v42 = vld [vmem:[#allocation2] sm:$0xff]  }
 0x473   : > { %v1424_v21 = vunpack.c.h.bf16 %v1426_v41  ;;  %v1423_v43 = vunpack.c.l.bf16 %v1426_v41  ;;  %v1420_v44 = vunpack.c.h.bf16 %v1418_v42  ;;  %v1419_v45 = vunpack.c.l.bf16 %v1418_v42 }
 0x475   : > { %927 = vmatpush.msra.mxu0 %v1424_v21 }
 0x477   : > { %928 = vmatpush.msra.mxu0 %v1423_v43 }
 0x479   : > { %929 = vmatpush.msra.mxu0 %v1420_v44 }
 0x47b   : > { %930 = vmatpush.msra.mxu0 %v1419_v45 }
 0x47c   : > { %1336 = vmatmul.msk.f32.vlgmr.msra.gmra.mxu0 %vm804_vm4, %v903_v46 }
 0x4f9   : > { %v932_v47 = vpop.f32.mrf.mxu0 }
 0x4fa   : > { %938 = vst.msk [vmem:[%s936_s10] sm:$0x3] %vm937_vm6, %v932_v47 }
 0x4fb PF: > { %p939_p8 = scmp.eq.s32.totalorder %s1792_s28, 2  ;;  %p940_p9 = scmp.eq.s32.totalorder %s1788_s27, 1 }
 0x4fd   : > { %p941_p10 = pnand %p940_p9, %p939_p8 }
 0x4fe   : > { %s1810_s7 = smov (!%p941_p10), 32   ;;  %s2311_s2 = sld [smem:[#allocation31_spill]] (!%p941_p10) }
 0x4ff   : > { %944 = sbr.rel (%p941_p10) target bundleno = 1930 (0x78a), region = 108  ;;  %s1811_s27 = smov (!%p941_p10), 64  }
 0x500   : > { %s2312_s0 = sld [smem:[#allocation33_spill]] (!%p941_p10) }
 0x504   : > { %v947_v48 = vld [vmem:[#allocation4 + $0x2] sm:$0x3]  ;;  %v1398_v49 = vld [vmem:[%s2311_s2 + $0x28] sm:$0xff]  ;;  %v949_v51 = vld [vmem:[#allocation4 + $0x4] sm:$0x3]  ;;  %vm958_vm7 = vcmask 261120  }
 0x505   : > { %951 = vrot.lane.b32.xlu0 %v947_v48, %s1810_s7  ;;  %1021 = vmatpush.bf16.msra.mxu0 %v1398_v49  ;;  %v1397_v50 = vld [vmem:[%s2311_s2 + $0x20] sm:$0xff]  ;;  %v1396_v52 = vld [vmem:[%s2311_s2 + $0x18] sm:$0xff]  ;;  %v1395_v53 = vld [vmem:[%s2311_s2 + $0x10] sm:$0xff]  ;;  %vm960_vm8 = vcmask 523264   ;;  %vm1015_vm9 = vcmask 785408   ;;  %s2313_s7 = sld [smem:[#allocation34_spill]] }
 0x506   : > { %v1394_v54 = vld [vmem:[%s2311_s2 + $0x8] sm:$0xff]  ;;  %v1393_v55 = vld [vmem:[%s2311_s2] sm:$0xff]  ;;  %v1559_v0 = vld [vmem:[#allocation12] ss:$0 sm:$0xff]  ;;  %vm1070_vm10 = vcmask 25600  }
 0x507   : > { %v945_v57 = vld [vmem:[#allocation4] sm:$0x3]  ;;  %v1400_v62 = vld [vmem:[%s2312_s0 + $0x8] sm:$0xff] }
 0x508   : > { %1063 = vmatpush.bf16.msra.mxu1 %v1400_v62  ;;  %v1399_v63 = vld [vmem:[%s2312_s0] sm:$0xff] }
 0x509   : > { %1022 = vmatpush.bf16.msra.mxu0 %v1397_v50 }
 0x50b   : > { %v1560_v9 = vld [vmem:[%s2313_s7] ss:$0 sm:$0xff] }
 0x50c   : > { %1064 = vmatpush.bf16.msra.mxu1 %v1399_v63 }
 0x50d   : > { %955 = vrot.lane.b32.xlu0 %v949_v51, %s1811_s27  ;;  %1023 = vmatpush.bf16.msra.mxu0 %v1396_v52 }
 0x511   : > { %1024 = vmatpush.bf16.msra.mxu0 %v1395_v53 }
 0x515   : > { %1025 = vmatpush.bf16.msra.mxu0 %v1394_v54 }
 0x519   : > { %1026 = vmatpush.bf16.msra.mxu0 %v1393_v55 }
 0x577   : > { %v952_v56 = vpop.permute.xlu0 %951 }
 0x578   : > { %v959_v58 = vsel %vm958_vm7, %v945_v57, %v952_v56 }
 0x57f   : > { %v956_v59 = vpop.permute.xlu0 %955 }
 0x580   : > { %v961_v60 = vsel %vm960_vm8, %v959_v58, %v956_v59 }
 0x581   : > { %v962_v61 = vpack.c.bf16 %v961_v60, %v961_v60 }
 0x583   : > { %1362 = vmatmul.msk.bf16.vlgmr.msra.gmra.mxu0 %vm1015_vm9, %v962_v61 }
 0x600   : > { %v1028_v1 = vpop.f32.mrf.mxu0 }
 0x601   : > { %v1029_v2 = vadd.f32 %v1559_v0, %v1028_v1 }
 0x603   : > { %v1032_v3 = vmax.f32 %v1029_v2, 0.0 }
 0x605   : > { %v1033_v5 = vpack.c.bf16 %v1032_v3, %v1032_v3 }
 0x607   : > { %1371 = vmatmul.msk.bf16.vlgmr.msra.gmra.mxu1 %vm958_vm7, %v1033_v5 }
 0x608   : > { %v1030_v7 = vpop.f32.mrf.mxu0 }
 0x684   : > { %v1066_v11 = vpop.f32.mrf.mxu1 }
 0x685   : > { %v1067_v14 = vadd.f32 %v1560_v9, %v1066_v11 }
 0x687   : > { %v1071_v16 = vsel %vm1070_vm10, %v1067_v14, -inf }
 0x688   : > { %1072 = vmax.xlane.f32.xlu1 %v1071_v16 }
 0x68c   : > { %v1068_v18 = vpop.f32.mrf.mxu1 }
 0x6fb   : > { %v1073_v20 = vpop.xlane.xlu1 %1072 }
 0x6fc   : > { %v1074_v22 = vsub.f32 %v1067_v14, %v1073_v20 }
 0x6fe   : > { %v1075_v23 = vmul.f32 1.442695, %v1074_v22 }
 0x700   : > { %1561 = vpow2.f32 %v1075_v23 }
 0x706   : > { %v1562_v24 = vpop.eup %1561 }
 0x707   : > { %v1077_v8 = vsel %vm1070_vm10, %v1562_v24, 0.0 }
 0x708   : > { %1078 = vadd.xlane.f32.xlu1 %v1077_v8 }
 0x77b   : > { %v1079_v10 = vpop.xlane.xlu1 %1078 }
 0x77c   : > { %1563 = vlog2.f32 %v1079_v10 }
 0x782   : > { %v1564_v25 = vpop.eup %1563 }
 0x783   : > { %v1081_v26 = vmul.f32 0.6931472, %v1564_v25 }
 0x785   : > { %v1082_v4 = vadd.f32 %v1081_v26, %v1073_v20 }
 0x787   : > { %v1083_v6 = vsub.f32 %v1067_v14, %v1082_v4 }
 0x789   : > { %1084 = vst.msk [vmem:[#allocation13] sm:$0x3] %vm1070_vm10, %v1083_v6 }
 0x78a PF: > { %p1462_p11 = scmp.eq.s32.totalorder %s1930_s14, 5  ;;  %s2314_s4 = sld [smem:[#allocation35_spill]] }
 0x78b   : > { %s1812_s1 = smov [#allocation13]  }
 0x78c   : > { %s1091_s3 = sshll.u32 %s1812_s1, 4  ;;  %s1092_s3 = int_to_ptr.vmem [resolvable:$true] %s1091_s3 }
 0x790   : > { %s1093_s29 = sshll.u32 %s2314_s4, 4  ;;  %s1094_s29 = int_to_ptr.hbm [resolvable:$true] %s1093_s29 }
 0x791   : > { %1440 = dma.vmem_to_hbm [thread:$0]  (%p1462_p11), %s1092_s3, 32, %s1094_s29, [#allocation7]  }
 0x792   : > { %1759 = dma.done.wait (%p1462_p11), [#allocation7], 32  }
 0x793   : > { %1761 = vsyncadd (%p1462_p11), [#allocation7], 4294967264 }
 0x794 PF: > { %s30_s13 = sadd.s32 1, %s1804_s13   ;;  %s2315_s14 = sld [smem:[#allocation19_spill]] }
 0x795   : > { %p27_p5 = scmp.ge.s32.totalorder %s30_s13, 8   ;;  %s2316_s27 = sld [smem:[#allocation22_spill]] }
 0x796   : > { %s2317_s28 = sld [smem:[#allocation20_spill]]  ;;  %s2320_s21 = smov %s1768_s22 }
 0x797   : > { %s2318_s29 = sld [smem:[#allocation21_spill]]  ;;  %s2321_s22 = smov %s1772_s23 }
 0x798   : > { %s2319_s16 = sld [smem:[#allocation23_spill]]  ;;  %s2322_s23 = smov %s2021_s26 }
 0x799   : > { %s2323_s24 = smov %s1780_s25 }
 0x79a   : > { %s2324_s25 = smov %s2315_s14  ;;  %29 = sbr.rel (!%p27_p5) target bundleno = 24 (0x18), region = 168 }
 0x79b   : > { %s2325_s26 = smov %s2316_s27 }
 0x79c   : > { %s2326_s27 = smov %s2317_s28  ;;  %s2327_s28 = smov %s1800_s30 }
 0x79e   : > { %s2328_s30 = smov %s2319_s16 }
 0x79f   :  { %1107 = vsyncpa [#allocation6], 1 }
 0x7a0   :  { %1109 = vsyncpa [#allocation6 + $0x1], 1 }
 0x7a1   :  { %1110 = vsyncpa [#allocation11], 1 }
 0x7a2   :  { %1112 = vsyncpa [#allocation11 + $0x1], 1 }
 0x7a3   :  { %1113 = vsyncpa [#allocation7], 1 }
 0x7a4   :  { %1115 = vsyncpa [#allocation7 + $0x1], 1 }
 0x7a5   :  { %1116 = vsyncpa [#allocation8], 1 }
 0x7a6   :  { %1118 = vsyncpa [#allocation8 + $0x1], 1 }

</bundles_post_ra>
